<compile_context>
chip_gen: v5e
topology: v5e:2x2
jax: 0.10.0
libtpu: 0.0.40
codegen_flags: <defaults>
</compile_context>

<pallas_src>
import functools

import jax
import jax.numpy as jnp
from jax.experimental import pallas as pl
from jax.experimental.pallas import tpu as pltpu

_MIB = 1024 * 1024
_NEG_PAD = -1e30  # bias for padded class columns -> exp() underflows to 0 in log_softmax

_BUFFERED_OK = None
_PHYS_VMEM = None


def _round_up(x, m):
    return (x + m - 1) // m * m


# --------------------------------------------------------------------------------------
# Hardware / capability probing (done once, outside jit)
# --------------------------------------------------------------------------------------
def _physical_vmem_bytes():
    """Physical VMEM per TensorCore; conservative 64 MiB fallback if undetectable."""
    global _PHYS_VMEM
    if _PHYS_VMEM is None:
        phys = None
        try:
            info = pltpu.get_tpu_info()
            for name in ("vmem_capacity_bytes", "vmem_size_bytes", "vmem_bytes"):
                v = getattr(info, name, None)
                if isinstance(v, int) and v > 0:
                    phys = v
                    break
        except Exception:
            phys = None
        _PHYS_VMEM = phys if phys is not None else 64 * _MIB
    return _PHYS_VMEM


def _single_buffer_ok():
    """Probe once whether pipeline_mode=pl.Buffered(1) compiles+runs on this backend."""
    global _BUFFERED_OK
    if _BUFFERED_OK is None:
        try:
            def _k(x_ref, o_ref):
                o_ref[...] = x_ref[...] + 1.0

            fn = pl.pallas_call(
                _k,
                out_shape=jax.ShapeDtypeStruct((8, 128), jnp.float32),
                grid_spec=pltpu.PrefetchScalarGridSpec(
                    num_scalar_prefetch=0,
                    grid=(1,),
                    in_specs=[pl.BlockSpec((8, 128), lambda i: (0, 0),
                                           pipeline_mode=pl.Buffered(1))],
                    out_specs=pl.BlockSpec((8, 128), lambda i: (0, 0)),
                ),
            )
            jax.block_until_ready(fn(jnp.zeros((8, 128), jnp.float32)))
            _BUFFERED_OK = True
        except Exception:
            _BUFFERED_OK = False
    return _BUFFERED_OK


# --------------------------------------------------------------------------------------
# Kernels
# --------------------------------------------------------------------------------------
def _mish(h):
    # h * tanh(softplus(h)) with softplus threshold=20 (torch):
    # tanh(log1p(e)) == t/(t+2) with e=exp(min(h,20)), t=e*(e+2); saturates to 1.0 in f32.
    e = jnp.exp(jnp.minimum(h, 20.0))
    t = e * (e + 2.0)
    return h * (t * pl.reciprocal(t + 2.0))


def _log_softmax(y):
    m = jnp.max(y, axis=-1, keepdims=True)
    z = y - m
    lse = jnp.log(jnp.sum(jnp.exp(z), axis=-1, keepdims=True))
    return z - lse


def _make_resident_kernel(want_logits):
    """Whole hidden dim per step; W1/W2 fully resident in VMEM."""

    def kernel(x_ref, w1_ref, b1_ref, w2_ref, b2_ref, *out_refs):
        # linear1 (bf16 MXU operands, f32 accumulation)
        h = jnp.dot(x_ref[...], w1_ref[...], preferred_element_type=jnp.float32)
        h = h + b1_ref[...]
        # dropout(p=0.2): inference-mode identity.
        h = _mish(h)
        # linear2
        y = jnp.dot(h.astype(jnp.bfloat16), w2_ref[...],
                    preferred_element_type=jnp.float32)
        y = y + b2_ref[...]
        if want_logits:
            y_ref, logp_ref = out_refs
            y_ref[...] = y
        else:
            (logp_ref,) = out_refs
        logp_ref[...] = _log_softmax(y)

    return kernel


def _make_ktiled_kernel(want_logits):
    """Hidden dim tiled (tk per step); f32 accumulator in VMEM scratch."""

    def kernel(x_ref, w1_ref, b1_ref, w2_ref, b2_ref, *refs):
        if want_logits:
            y_ref, logp_ref, acc_ref = refs
        else:
            logp_ref, acc_ref = refs
            y_ref = None
        k = pl.program_id(1)

        @pl.when(k == 0)
        def _():
            acc_ref[...] = jnp.zeros_like(acc_ref)

        # linear1 for this hidden chunk
        h = jnp.dot(x_ref[...], w1_ref[...], preferred_element_type=jnp.float32)
        h = h + b1_ref[...]
        # dropout(p=0.2): inference-mode identity.
        h = _mish(h)  # elementwise per hidden column -> exact under chunking
        acc_ref[...] += jnp.dot(h.astype(jnp.bfloat16), w2_ref[...],
                                preferred_element_type=jnp.float32)

        @pl.when(k == pl.num_programs(1) - 1)
        def _():
            y = acc_ref[...] + b2_ref[...]
            if want_logits:
                y_ref[...] = y
            logp_ref[...] = _log_softmax(y)

    return kernel


# --------------------------------------------------------------------------------------
# VMEM-budget driven configuration
# --------------------------------------------------------------------------------------
def _resident_vmem_bytes(tm, d_in_p, d_out_p, n_out):
    weights = d_in_p * d_in_p * 2 + d_in_p * d_out_p * 2 + (d_in_p + d_out_p) * 4
    x_bufs = 2 * tm * d_in_p * 2
    out_bufs = n_out * 2 * tm * d_out_p * 4
    interm = tm * d_in_p * 6 + tm * d_out_p * 12   # h f32 + h bf16 + softmax temps
    return weights + x_bufs + out_bufs + interm


def _ktiled_vmem_bytes(tm, tk, d_in_p, d_out_p, n_out):
    x_bufs = 2 * tm * d_in_p * 2
    w_bufs = 2 * (d_in_p * tk + tk * d_out_p) * 2
    b_bufs = 2 * (tk + d_out_p) * 4
    acc = tm * d_out_p * 4
    out_bufs = n_out * 2 * tm * d_out_p * 4
    interm = tm * tk * 6 + tm * d_out_p * 12
    return x_bufs + w_bufs + b_bufs + acc + out_bufs + interm


def _choose_config(M, d_in_p, d_out_p, n_out, force_mode=None, force_tk=None):
    phys = _physical_vmem_bytes()
    if phys <= 80 * _MIB:          # v7x-class: 64 MiB VMEM per TensorCore
        budget = 46 * _MIB
        vmem_limit = 56 * _MIB
    else:                          # v5e / v6e: 128 MiB VMEM
        budget = 88 * _MIB
        vmem_limit = 100 * _MIB

    # Row tile: collapse tiny M to one step; otherwise guarantee >= 2 grid steps so
    # dimension_semantics=("parallel",) can shard rows across both v7x TensorCores.
    if M <= 256:
        tm_req = max(16, _round_up(M, 16))          # 16: bf16 sublane packing
    else:
        tm_req = min(512, _round_up(pl.cdiv(M, 2), 16))

    tm_cands = sorted({min(c, tm_req) for c in (tm_req, 256, 128, 64, 32, 16)},
                      reverse=True)

    def pick_tm(fits):
        for c in tm_cands:
            if fits(c):
                return c
        return 16

    mode = force_mode
    if mode is None:
        # Prefer the simple weight-resident kernel only if it fits with a decent row tile.
        tm_floor = min(tm_req, 128)
        if _resident_vmem_bytes(tm_floor, d_in_p, d_out_p, n_out) <= budget:
            mode = "resident"
        else:
            mode = "ktiled"

    if mode == "resident":
        tm = pick_tm(lambda c: _resident_vmem_bytes(c, d_in_p, d_out_p, n_out) <= budget)
        return mode, tm, None, vmem_limit

    # Hidden-dim tiled path (large D_in / small VMEM).
    if force_tk is not None:
        tk = int(force_tk)
    else:
        tk = 128
        for cand in (1024, 768, 512, 384, 256, 128):
            if d_in_p % cand == 0:
                tk = cand
                break
    tm = pick_tm(lambda c: _ktiled_vmem_bytes(c, tk, d_in_p, d_out_p, n_out) <= budget)
    return mode, tm, tk, vmem_limit


# --------------------------------------------------------------------------------------
# Parameter prep (done ONCE, not per forward call)
# --------------------------------------------------------------------------------------
def prepare_params(w1, b1, w2, b2):
    """Pad feature/class dims to multiples of 128 and cast weights to bf16, once."""
    d_in, d_out = int(w1.shape[0]), int(w2.shape[1])
    d_in_p = _round_up(d_in, 128)
    d_out_p = _round_up(d_out, 128)

    w1 = jnp.asarray(w1, jnp.float32)
    w2 = jnp.asarray(w2, jnp.float32)
    b1 = jnp.asarray(b1, jnp.float32).reshape(1, -1)
    b2 = jnp.asarray(b2, jnp.float32).reshape(1, -1)

    if d_in_p != d_in:
        w1 = jnp.pad(w1, ((0, d_in_p - d_in), (0, d_in_p - d_in)))
        b1 = jnp.pad(b1, ((0, 0), (0, d_in_p - d_in)))
        w2 = jnp.pad(w2, ((0, d_in_p - d_in), (0, 0)))
    if d_out_p != d_out:
        w2 = jnp.pad(w2, ((0, 0), (0, d_out_p - d_out)))
        b2 = jnp.pad(b2, ((0, 0), (0, d_out_p - d_out)), constant_values=_NEG_PAD)

    return {"w1": w1.astype(jnp.bfloat16), "b1": b1,
            "w2": w2.astype(jnp.bfloat16), "b2": b2, "d_out": d_out}


# --------------------------------------------------------------------------------------
# Forward
# --------------------------------------------------------------------------------------
@functools.partial(
    jax.jit,
    static_argnames=("d_out", "want_logits", "mode", "tm", "tk", "single_buffer",
                     "vmem_limit"))
def _forward_impl(x, w1_p, b1_p, w2_p, b2_p, *, d_out, want_logits, mode, tm, tk,
                  single_buffer, vmem_limit):
    B, S, d_in = x.shape
    d_in_p = w1_p.shape[0]
    d_out_p = w2_p.shape[1]
    M = B * S
    M_p = _round_up(M, tm)

    x2 = x.reshape(M, d_in)
    if (M_p != M) or (d_in_p != d_in):
        x2 = jnp.pad(x2, ((0, M_p - M), (0, d_in_p - d_in)))
    x2 = x2.astype(jnp.bfloat16)

    n_out = 2 if want_logits else 1
    out_shape = tuple(jax.ShapeDtypeStruct((M_p, d_out_p), jnp.float32)
                      for _ in range(n_out))

    if mode == "resident":
        grid = (M_p // tm,)
        dims = ("parallel",)

        def _const1(i):
            return (0, 0)

        def resident_spec(shape):
            if single_buffer:
                return pl.BlockSpec(shape, _const1, pipeline_mode=pl.Buffered(1))
            return pl.BlockSpec(shape, _const1)

        in_specs = [
            pl.BlockSpec((tm, d_in_p), lambda i: (i, 0)),      # x rows (pipelined)
            resident_spec((d_in_p, d_in_p)),                   # W1 (resident)
            resident_spec((1, d_in_p)),                        # b1
            resident_spec((d_in_p, d_out_p)),                  # W2 (resident)
            resident_spec((1, d_out_p)),                       # b2
        ]
        out_specs = [pl.BlockSpec((tm, d_out_p), lambda i: (i, 0))
                     for _ in range(n_out)]
        scratch = []
        kernel = _make_resident_kernel(want_logits)
    else:  # "ktiled"
        nk = d_in_p // tk
        grid = (M_p // tm, nk)
        dims = ("parallel", "arbitrary")

        def _const2(i, k):
            return (0, 0)

        if single_buffer:
            b2_spec = pl.BlockSpec((1, d_out_p), _const2, pipeline_mode=pl.Buffered(1))
        else:
            b2_spec = pl.BlockSpec((1, d_out_p), _const2)

        in_specs = [
            pl.BlockSpec((tm, d_in_p), lambda i, k: (i, 0)),   # x rows (resident over k)
            pl.BlockSpec((d_in_p, tk), lambda i, k: (0, k)),   # W1 hidden chunk
            pl.BlockSpec((1, tk), lambda i, k: (0, k)),        # b1 chunk
            pl.BlockSpec((tk, d_out_p), lambda i, k: (k, 0)),  # W2 chunk
            b2_spec,                                           # b2 (resident)
        ]
        out_specs = [pl.BlockSpec((tm, d_out_p), lambda i, k: (i, 0))
                     for _ in range(n_out)]
        scratch = [pltpu.VMEM((tm, d_out_p), jnp.float32)]
        kernel = _make_ktiled_kernel(want_logits)

    outs = pl.pallas_call(
        kernel,
        out_shape=out_shape,
        grid_spec=pltpu.PrefetchScalarGridSpec(
            num_scalar_prefetch=0,
            grid=grid,
            in_specs=in_specs,
            out_specs=out_specs,
            scratch_shapes=scratch,
        ),
        compiler_params=pltpu.CompilerParams(
            dimension_semantics=dims,
            vmem_limit_bytes=vmem_limit,
        ),
    )(x2, w1_p, b1_p, w2_p, b2_p)

    logp = outs[-1][:M, :d_out].reshape(B, S, d_out)
    if want_logits:
        y = outs[0][:M, :d_out].reshape(B, S, d_out)
        return y, logp
    return logp


def classifier_forward(x, params, *, want_logits=True, force_mode=None, force_tk=None):
    """x: [B, S, D_in] f32 -> (logits, log_probs) or just log_probs."""
    w1_p, b1_p, w2_p, b2_p = params["w1"], params["b1"], params["w2"], params["b2"]
    d_out = params["d_out"]
    B, S, _ = x.shape
    M = B * S
    d_in_p = int(w1_p.shape[0])
    d_out_p = int(w2_p.shape[1])

    mode, tm, tk, vmem_limit = _choose_config(
        M, d_in_p, d_out_p, n_out=2 if want_logits else 1,
        force_mode=force_mode, force_tk=force_tk)
    single_buffer = _single_buffer_ok()

    return _forward_impl(x, w1_p, b1_p, w2_p, b2_p,
                         d_out=d_out, want_logits=want_logits, mode=mode, tm=tm, tk=tk,
                         single_buffer=single_buffer, vmem_limit=vmem_limit)


# --------------------------------------------------------------------------------------
# Init + reference
# --------------------------------------------------------------------------------------
def init_params(key, input_dim, output_dim):
    """Deterministic init mimicking nn.Linear defaults (uniform +/- 1/sqrt(fan_in))."""
    k1, k2, k3, k4 = jax.random.split(key, 4)
    bound = 1.0 / jnp.sqrt(input_dim)
    w1 = jax.random.uniform(k1, (input_dim, input_dim), jnp.float32, -bound, bound)
    b1 = jax.random.uniform(k2, (1, input_dim), jnp.float32, -bound, bound)
    w2 = jax.random.uniform(k3, (input_dim, output_dim), jnp.float32, -bound, bound)
    b2 = jax.random.uniform(k4, (1, output_dim), jnp.float32, -bound, bound)
    return w1, b1, w2, b2


def _softplus(x):
    # Matches torch.nn.Softplus(beta=1, threshold=20).
    return jnp.where(x > 20.0, x, jnp.log1p(jnp.exp(jnp.minimum(x, 20.0))))


def _reference(x, w1, b1, w2, b2):
    h = x @ w1 + b1[0]
    h = h * jnp.tanh(_softplus(h))
    y = h @ w2 + b2[0]
    return y, jax.nn.log_softmax(y, axis=-1)


if __name__ == "__main__":
    key = jax.random.PRNGKey(0)
    kx, kp, kx2, kp2 = jax.random.split(key, 4)

    # --- Test 1: small shape, weight-resident path, both outputs -----------------------
    B, S, D_in, D_out = 2, 8, 32, 16
    x = jax.random.normal(kx, (B, S, D_in), jnp.float32)
    w1, b1, w2, b2 = init_params(kp, D_in, D_out)
    params = prepare_params(w1, b1, w2, b2)

    logits, log_probs = classifier_forward(x, params)
    jax.block_until_ready((logits, log_probs))
    ref_logits, ref_logp = _reference(x, w1, b1, w2, b2)
    assert logits.shape == (B, S, D_out) and log_probs.shape == (B, S, D_out)
    assert jnp.allclose(logits, ref_logits, atol=3e-2, rtol=3e-2)
    assert jnp.allclose(log_probs, ref_logp, atol=3e-2, rtol=3e-2)
    assert bool(jnp.all(jnp.isfinite(log_probs)))

    # --- Test 2: log_probs-only output path --------------------------------------------
    logp_only = classifier_forward(x, params, want_logits=False)
    jax.block_until_ready(logp_only)
    assert jnp.allclose(logp_only, ref_logp, atol=3e-2, rtol=3e-2)

    # --- Test 3: hidden-dim (k) tiled path (used for large D_in on small-VMEM parts) ---
    B2, S2, D_in2, D_out2 = 2, 24, 256, 40
    x2 = jax.random.normal(kx2, (B2, S2, D_in2), jnp.float32)
    w1b, b1b, w2b, b2b = init_params(kp2, D_in2, D_out2)
    params2 = prepare_params(w1b, b1b, w2b, b2b)
    logits2, log_probs2 = classifier_forward(x2, params2,
                                             force_mode="ktiled", force_tk=128)
    jax.block_until_ready((logits2, log_probs2))
    ref_logits2, ref_logp2 = _reference(x2, w1b, b1b, w2b, b2b)
    assert logits2.shape == (B2, S2, D_out2)
    assert jnp.allclose(logits2, ref_logits2, atol=5e-2, rtol=5e-2)
    assert jnp.allclose(log_probs2, ref_logp2, atol=5e-2, rtol=5e-2)
    assert bool(jnp.all(jnp.isfinite(log_probs2)))

    print("KERNEL_OK")
</pallas_src>

<mosaic_0001>
module attributes {stable_mosaic.version = 11 : i64} {
  func.func @_k(%arg0: i32, %arg1: memref<8x128xf32, #tpu.memory_space<vmem>>, %arg2: memref<8x128xf32, #tpu.memory_space<vmem>>) attributes {dimension_semantics = [#tpu.dimension_semantics<arbitrary>], iteration_bounds = array<i64: 1>, scalar_prefetch = 0 : i64, scratch_operands = 0 : i64, tpu.core_type = #tpu.core_type<tc>, window_params = [{pipeline_mode = #tpu.pipeline_mode<synchronous>, transform_indices = @transform_0, window_bounds = array<i64: 8, 128>}, {pipeline_mode = #tpu.pipeline_mode<synchronous>, transform_indices = @transform_1, window_bounds = array<i64: 8, 128>}]} {
    %c0 = arith.constant 0 : index
    %c0_0 = arith.constant 0 : index
    %0 = vector.load %arg1[%c0, %c0_0] : memref<8x128xf32, #tpu.memory_space<vmem>>, vector<8x128xf32>
    %cst = arith.constant 1.000000e+00 : f32
    %1 = vector.broadcast %cst : f32 to vector<8x128xf32>
    %2 = arith.addf %0, %1 : vector<8x128xf32>
    %c0_1 = arith.constant 0 : index
    %c0_2 = arith.constant 0 : index
    %3 = vector.load %arg2[%c0_1, %c0_2] : memref<8x128xf32, #tpu.memory_space<vmem>>, vector<8x128xf32>
    tpu.vector_store %arg2[%c0_1, %c0_2], %2 {strides = array<i32>} : memref<8x128xf32, #tpu.memory_space<vmem>>, vector<8x128xf32>,
    return
  }
  func.func @transform_0(%arg0: i32) -> (i32, i32) {
    %c0_i32 = arith.constant 0 : i32
    %c0_i32_0 = arith.constant 0 : i32
    %c0_i32_1 = arith.constant 0 : i32
    return %c0_i32, %c0_i32_0 : i32, i32
  }
  func.func @transform_1(%arg0: i32) -> (i32, i32) {
    %c0_i32 = arith.constant 0 : i32
    %c0_i32_0 = arith.constant 0 : i32
    %c0_i32_1 = arith.constant 0 : i32
    return %c0_i32, %c0_i32_0 : i32, i32
  }
}

module attributes {stable_mosaic.version = 11 : i64} {
  func.func @kernel(%arg0: i32, %arg1: memref<16x128xbf16, #tpu.memory_space<vmem>>, %arg2: memref<128x128xbf16, #tpu.memory_space<vmem>>, %arg3: memref<1x128xf32, #tpu.memory_space<vmem>>, %arg4: memref<128x128xbf16, #tpu.memory_space<vmem>>, %arg5: memref<1x128xf32, #tpu.memory_space<vmem>>, %arg6: memref<16x128xf32, #tpu.memory_space<vmem>>, %arg7: memref<16x128xf32, #tpu.memory_space<vmem>>) attributes {dimension_semantics = [#tpu.dimension_semantics<parallel>], iteration_bounds = array<i64: 1>, scalar_prefetch = 0 : i64, scratch_operands = 0 : i64, tpu.core_type = #tpu.core_type<tc>, window_params = [{transform_indices = @transform_0, window_bounds = array<i64: 16, 128>}, {pipeline_mode = #tpu.pipeline_mode<synchronous>, transform_indices = @transform_1, window_bounds = array<i64: 128, 128>}, {pipeline_mode = #tpu.pipeline_mode<synchronous>, transform_indices = @transform_2, window_bounds = array<i64: 1, 128>}, {pipeline_mode = #tpu.pipeline_mode<synchronous>, transform_indices = @transform_3, window_bounds = array<i64: 128, 128>}, {pipeline_mode = #tpu.pipeline_mode<synchronous>, transform_indices = @transform_4, window_bounds = array<i64: 1, 128>}, {transform_indices = @transform_5, window_bounds = array<i64: 16, 128>}, {transform_indices = @transform_6, window_bounds = array<i64: 16, 128>}]} {
    %c0 = arith.constant 0 : index
    %c0_0 = arith.constant 0 : index
    %0 = vector.load %arg1[%c0, %c0_0] : memref<16x128xbf16, #tpu.memory_space<vmem>>, vector<16x128xbf16>
    %c0_1 = arith.constant 0 : index
    %c0_2 = arith.constant 0 : index
    %1 = vector.load %arg2[%c0_1, %c0_2] : memref<128x128xbf16, #tpu.memory_space<vmem>>, vector<128x128xbf16>
    %cst = arith.constant dense<0.000000e+00> : vector<16x128xf32>
    %2 = tpu.matmul %0, %1, %cst {dimension_numbers = #tpu.dot_dimension_numbers<[1], [0], [0], [1], [0, 0, 1, 1], [], []>} : vector<16x128xbf16>, vector<128x128xbf16>, vector<16x128xf32> -> vector<16x128xf32>
    %c0_3 = arith.constant 0 : index
    %c0_4 = arith.constant 0 : index
    %3 = vector.load %arg3[%c0_3, %c0_4] : memref<1x128xf32, #tpu.memory_space<vmem>>, vector<1x128xf32>
    %4 = vector.broadcast %3 : vector<1x128xf32> to vector<16x128xf32>
    %5 = arith.addf %2, %4 : vector<16x128xf32>
    %cst_5 = arith.constant 2.000000e+01 : f32
    %6 = vector.broadcast %cst_5 : f32 to vector<16x128xf32>
    %7 = arith.minimumf %5, %6 : vector<16x128xf32>
    %8 = math.exp %7 : vector<16x128xf32>
    %cst_6 = arith.constant 2.000000e+00 : f32
    %9 = vector.broadcast %cst_6 : f32 to vector<16x128xf32>
    %10 = arith.addf %8, %9 : vector<16x128xf32>
    %11 = arith.mulf %8, %10 : vector<16x128xf32>
    %cst_7 = arith.constant 2.000000e+00 : f32
    %12 = vector.broadcast %cst_7 : f32 to vector<16x128xf32>
    %13 = arith.addf %11, %12 : vector<16x128xf32>
    %14 = tpu.reciprocal %13 : vector<16x128xf32> -> vector<16x128xf32>
    %15 = arith.mulf %11, %14 : vector<16x128xf32>
    %16 = arith.mulf %5, %15 : vector<16x128xf32>
    %17 = arith.truncf %16 : vector<16x128xf32> to vector<16x128xbf16>
    %c0_8 = arith.constant 0 : index
    %c0_9 = arith.constant 0 : index
    %18 = vector.load %arg4[%c0_8, %c0_9] : memref<128x128xbf16, #tpu.memory_space<vmem>>, vector<128x128xbf16>
    %cst_10 = arith.constant dense<0.000000e+00> : vector<16x128xf32>
    %19 = tpu.matmul %17, %18, %cst_10 {dimension_numbers = #tpu.dot_dimension_numbers<[1], [0], [0], [1], [0, 0, 1, 1], [], []>} : vector<16x128xbf16>, vector<128x128xbf16>, vector<16x128xf32> -> vector<16x128xf32>
    %c0_11 = arith.constant 0 : index
    %c0_12 = arith.constant 0 : index
    %20 = vector.load %arg5[%c0_11, %c0_12] : memref<1x128xf32, #tpu.memory_space<vmem>>, vector<1x128xf32>
    %21 = vector.broadcast %20 : vector<1x128xf32> to vector<16x128xf32>
    %22 = arith.addf %19, %21 : vector<16x128xf32>
    %c0_13 = arith.constant 0 : index
    %c0_14 = arith.constant 0 : index
    %23 = vector.load %arg6[%c0_13, %c0_14] : memref<16x128xf32, #tpu.memory_space<vmem>>, vector<16x128xf32>
    tpu.vector_store %arg6[%c0_13, %c0_14], %22 {strides = array<i32>} : memref<16x128xf32, #tpu.memory_space<vmem>>, vector<16x128xf32>,
    %cst_15 = arith.constant dense<0xFF800000> : vector<16xf32>
    %24 = vector.multi_reduction <maximumf>, %22, %cst_15 [1] : vector<16x128xf32> to vector<16xf32>
    %25 = vector.shape_cast %24 : vector<16xf32> to vector<16x1xf32>
    %26 = vector.broadcast %25 : vector<16x1xf32> to vector<16x128xf32>
    %27 = arith.subf %22, %26 : vector<16x128xf32>
    %28 = math.exp %27 : vector<16x128xf32>
    %cst_16 = arith.constant dense<0.000000e+00> : vector<16xf32>
    %29 = vector.multi_reduction <add>, %28, %cst_16 [1] : vector<16x128xf32> to vector<16xf32>
    %30 = vector.shape_cast %29 : vector<16xf32> to vector<16x1xf32>
    %31 = math.log %30 : vector<16x1xf32>
    %32 = vector.broadcast %31 : vector<16x1xf32> to vector<16x128xf32>
    %33 = arith.subf %27, %32 : vector<16x128xf32>
    %c0_17 = arith.constant 0 : index
    %c0_18 = arith.constant 0 : index
    %34 = vector.load %arg7[%c0_17, %c0_18] : memref<16x128xf32, #tpu.memory_space<vmem>>, vector<16x128xf32>
    tpu.vector_store %arg7[%c0_17, %c0_18], %33 {strides = array<i32>} : memref<16x128xf32, #tpu.memory_space<vmem>>, vector<16x128xf32>,
    return
  }
  func.func @transform_0(%arg0: i32) -> (i32, i32) {
    %c0_i32 = arith.constant 0 : i32
    %c0_i32_0 = arith.constant 0 : i32
    return %arg0, %c0_i32 : i32, i32
  }
  func.func @transform_1(%arg0: i32) -> (i32, i32) {
    %c0_i32 = arith.constant 0 : i32
    %c0_i32_0 = arith.constant 0 : i32
    %c0_i32_1 = arith.constant 0 : i32
    return %c0_i32, %c0_i32_0 : i32, i32
  }
  func.func @transform_2(%arg0: i32) -> (i32, i32) {
    %c0_i32 = arith.constant 0 : i32
    %c0_i32_0 = arith.constant 0 : i32
    %c0_i32_1 = arith.constant 0 : i32
    return %c0_i32, %c0_i32_0 : i32, i32
  }
  func.func @transform_3(%arg0: i32) -> (i32, i32) {
    %c0_i32 = arith.constant 0 : i32
    %c0_i32_0 = arith.constant 0 : i32
    %c0_i32_1 = arith.constant 0 : i32
    return %c0_i32, %c0_i32_0 : i32, i32
  }
  func.func @transform_4(%arg0: i32) -> (i32, i32) {
    %c0_i32 = arith.constant 0 : i32
    %c0_i32_0 = arith.constant 0 : i32
    %c0_i32_1 = arith.constant 0 : i32
    return %c0_i32, %c0_i32_0 : i32, i32
  }
  func.func @transform_5(%arg0: i32) -> (i32, i32) {
    %c0_i32 = arith.constant 0 : i32
    %c0_i32_0 = arith.constant 0 : i32
    return %arg0, %c0_i32 : i32, i32
  }
  func.func @transform_6(%arg0: i32) -> (i32, i32) {
    %c0_i32 = arith.constant 0 : i32
    %c0_i32_0 = arith.constant 0 : i32
    return %arg0, %c0_i32 : i32, i32
  }
}

</mosaic_0001>

<bundles_post_ra>
// kernel: tpu_custom_call.1
= control target key start
LH: loop header
LB: loop body
LE: loop exit
PB: predicated region body
PF: predicated region fallthrough
CT: control target
= control target key end

     0   :  { %6 = vsyncpa [#allocation3], 0  ;;  %s115_s0 = inlined_call_operand.hbm [shape: f32[8,128], index: 0, kind: input, shape index: {}]   ;;  %s116_s1 = inlined_call_operand.hbm [shape: f32[8,128], index: 1, kind: output, shape index: {}]  }
   0x1   :  { %7 = vsyncpa [#allocation4], 0  ;;  %s13_s8 = sshll.u32 %s115_s0, 4  ;;  %s97_s9 = smov [#allocation2]   ;;  %s14_s8 = int_to_ptr.hbm [resolvable:$true] %s13_s8 }
   0x2   :  { %s15_s10 = sshll.u32 %s97_s9, 4  ;;  %s16_s10 = int_to_ptr.vmem [resolvable:$true] %s15_s10 }
   0x3   :  { %18 = dma.hbm_to_vmem [thread:$0]  %s14_s8, 128, %s16_s10, [#allocation3]  }
   0x4   :  { %93 = dma.done.wait [#allocation3], 128  }
   0x5   :  { %94 = vsyncadd [#allocation3], 4294967168  ;;  %s98_s11 = smov [#allocation5]   ;;  %s33_s15 = sshll.u32 %s116_s1, 4  ;;  %v23_v0 = vld [vmem:[#allocation2] sm:$0xff]  ;;  %s34_s15 = int_to_ptr.hbm [resolvable:$true] %s33_s15 }
   0x6   :  { %s31_s12 = sshll.u32 %s98_s11, 4  ;;  %v24_v1 = vadd.f32 1.0, %v23_v0  ;;  %s32_s12 = int_to_ptr.vmem [resolvable:$true] %s31_s12 }
   0x8   :  { %25 = vst [vmem:[#allocation5] sm:$0xff] %v24_v1 }
   0x9   :  { %36 = dma.vmem_to_hbm [thread:$0]  %s32_s12, 128, %s34_s15, [#allocation4]  }
   0xa   :  { %95 = dma.done.wait [#allocation4], 128  }
   0xb   :  { %96 = vsyncadd [#allocation4], 4294967168 }
   0xc   :  { %41 = vsyncpa [#allocation3], 1 }
   0xd   :  { %42 = vsyncpa [#allocation4], 1 }

// kernel: _forward_impl.1
= control target key start
LH: loop header
LB: loop body
LE: loop exit
PB: predicated region body
PF: predicated region fallthrough
CT: control target
= control target key end

     0   :  { %12 = vsyncpa [#allocation3], 0  ;;  %s530_s0 = inlined_call_operand.vmem [shape: bf16[16,128], index: 0, kind: input, shape index: {}]   ;;  %s531_s1 = inlined_call_operand.hbm [shape: bf16[128,128], index: 1, kind: input, shape index: {}]   ;;  %s532_s2 = inlined_call_operand.vmem [shape: f32[1,128], index: 2, kind: input, shape index: {}]   ;;  %s533_s3 = inlined_call_operand.hbm [shape: bf16[128,128], index: 3, kind: input, shape index: {}]   ;;  %s534_s4 = inlined_call_operand.vmem [shape: f32[1,128], index: 4, kind: input, shape index: {}]   ;;  %s535_s5 = inlined_call_operand.vmem [shape: f32[16,128], index: 5, kind: output, shape index: {0}]   ;;  %s536_s6 = inlined_call_operand.vmem [shape: f32[16,128], index: 6, kind: output, shape index: {1}]  }
   0x1   :  { %s20_s23 = sshll.u32 %s531_s1, 4  ;;  %s21_s23 = int_to_ptr.hbm [resolvable:$true] %s20_s23 }
   0x2   :  { %13 = vsyncpa [#allocation5], 0  ;;  %s464_s24 = smov [#allocation2]   ;;  %s35_s28 = sshll.u32 %s533_s3, 4  ;;  %s36_s28 = int_to_ptr.hbm [resolvable:$true] %s35_s28 }
   0x3   :  { %s22_s25 = sshll.u32 %s464_s24, 4  ;;  %s465_s29 = smov 64   ;;  %s23_s25 = int_to_ptr.vmem [resolvable:$true] %s22_s25 }
   0x4   :  { %s466_s30 = smov 4   ;;  %s467_s7 = smov [#allocation4]  }
   0x5   :  { %28 = dma.hbm_to_vmem [thread:$0]  %s21_s23, 1024, %s23_s25, [#allocation3], %s465_s29, %s465_s29, %s466_s30  }
   0x6   :  { %s37_s8 = sshll.u32 %s467_s7, 4  ;;  %s38_s8 = int_to_ptr.vmem [resolvable:$true] %s37_s8 }
   0x7   :  { %43 = dma.hbm_to_vmem [thread:$0]  %s36_s28, 1024, %s38_s8, [#allocation5], %s465_s29, %s465_s29, %s466_s30  }
   0x8   :  { %460 = dma.done.wait [#allocation3], 1024  }
   0x9   :  { %461 = vsyncadd [#allocation3], 4294966272 }
   0xa   :  { %462 = dma.done.wait [#allocation5], 1024  }
   0xb   :  { %463 = vsyncadd [#allocation5], 4294966272  ;;  %v381_v0 = vld [vmem:[#allocation2 + $0x38] sm:$0xff]  ;;  %v380_v1 = vld [vmem:[#allocation2 + $0x30] sm:$0xff] }
   0xc   :  { %130 = vmatpush.bf16.msra.mxu0 %v381_v0  ;;  %v379_v2 = vld [vmem:[#allocation2 + $0x28] sm:$0xff]  ;;  %v378_v3 = vld [vmem:[#allocation2 + $0x20] sm:$0xff]  ;;  %v377_v4 = vld [vmem:[#allocation2 + $0x18] sm:$0xff] }
   0xd   :  { %v376_v5 = vld [vmem:[#allocation2 + $0x10] sm:$0xff]  ;;  %v375_v6 = vld [vmem:[#allocation2 + $0x8] sm:$0xff]  ;;  %v374_v7 = vld [vmem:[#allocation2] sm:$0xff] }
   0xe   :  { %v373_v8 = vld [vmem:[%s530_s0] sm:$0xff]  ;;  %v389_v9 = vld [vmem:[#allocation4 + $0x38] sm:$0xff]  ;;  %v388_v10 = vld [vmem:[#allocation4 + $0x30] sm:$0xff] }
   0xf   :  { %257 = vmatpush.bf16.msra.mxu1 %v389_v9  ;;  %v387_v11 = vld [vmem:[#allocation4 + $0x28] sm:$0xff]  ;;  %v394_v12 = vld [vmem:[%s532_s2] ss:$0 sm:$0xff]  ;;  %v385_v16 = vld [vmem:[#allocation4 + $0x18] sm:$0xff] }
  0x10   :  { %131 = vmatpush.bf16.msra.mxu0 %v380_v1  ;;  %v386_v13 = vld [vmem:[#allocation4 + $0x20] sm:$0xff]  ;;  %v384_v19 = vld [vmem:[#allocation4 + $0x10] sm:$0xff]  ;;  %v383_v22 = vld [vmem:[#allocation4 + $0x8] sm:$0xff] }
  0x11   :  { %v382_v27 = vld [vmem:[#allocation4] sm:$0xff] }
  0x12   :  { %v395_v59 = vld [vmem:[%s534_s4] ss:$0 sm:$0xff] }
  0x13   :  { %258 = vmatpush.bf16.msra.mxu1 %v388_v10 }
  0x14   :  { %132 = vmatpush.bf16.msra.mxu0 %v379_v2 }
  0x17   :  { %259 = vmatpush.bf16.msra.mxu1 %v387_v11 }
  0x18   :  { %133 = vmatpush.bf16.msra.mxu0 %v378_v3 }
  0x1b   :  { %260 = vmatpush.bf16.msra.mxu1 %v386_v13 }
  0x1c   :  { %134 = vmatpush.bf16.msra.mxu0 %v377_v4 }
  0x1f   :  { %261 = vmatpush.bf16.msra.mxu1 %v385_v16 }
  0x20   :  { %135 = vmatpush.bf16.msra.mxu0 %v376_v5 }
  0x23   :  { %262 = vmatpush.bf16.msra.mxu1 %v384_v19 }
  0x24   :  { %136 = vmatpush.bf16.msra.mxu0 %v375_v6 }
  0x27   :  { %263 = vmatpush.bf16.msra.mxu1 %v383_v22 }
  0x28   :  { %137 = vmatpush.bf16.msra.mxu0 %v374_v7 }
  0x2b   :  { %138 = vmatmul.bf16.vlgmr.msra.gmra.mxu0 %v373_v8  ;;  %264 = vmatpush.bf16.msra.mxu1 %v382_v27 }
  0xa8   :  { %v139_v14 = vpop.f32.mrf.mxu0 }
  0xa9   :  { %v140_v15 = vadd.f32 %v394_v12, %v139_v14 }
  0xab   :  { %v144_v17 = vmin.f32 %v140_v15, 20.0 }
  0xad   :  { %v146_v18 = vmul.f32 1.442695, %v144_v17 }
  0xaf   :  { %396 = vpow2.f32 %v146_v18 }
  0xb0   :  { %v141_v20 = vpop.f32.mrf.mxu0 }
  0xb1   :  { %v142_v21 = vadd.f32 %v394_v12, %v141_v20 }
  0xb3   :  { %v145_v23 = vmin.f32 %v142_v21, 20.0 }
  0xb5   :  { %v397_v24 = vpop.eup %396  ;;  %v148_v25 = vmul.f32 1.442695, %v145_v23 }
  0xb6   :  { %v150_v26 = vadd.f32 2.0, %v397_v24 }
  0xb7   :  { %398 = vpow2.f32 %v148_v25 }
  0xb8   :  { %v152_v28 = vmul.f32 %v397_v24, %v150_v26 }
  0xba   :  { %v154_v29 = vadd.f32 2.0, %v152_v28 }
  0xbc   :  { %400 = vrcp.f32 %v154_v29  ;;  %v167_v40 = vand.u32 2147483648, %v154_v29  ;;  %vm161_vm1 = vweird.f32 %v154_v29  ;;  %v165_v41 = vand.u32 2147483647, %v154_v29 }
  0xbd   :  { %v399_v30 = vpop.eup %398 }
  0xbe   :  { %v151_v31 = vadd.f32 2.0, %v399_v30  ;;  %v168_v45 = vor.u32 1.1754944e-38, %v167_v40  ;;  %vm166_vm3 = vcmp.eq.f32.partialorder %v165_v41, 8.507059e+37 }
  0xc0   :  { %v153_v32 = vmul.f32 %v399_v30, %v151_v31 }
  0xc2   :  { %v401_v33 = vpop.eup %400  ;;  %v155_v34 = vadd.f32 2.0, %v153_v32 }
  0xc3   :  { %v157_v35 = vmul.f32 %v401_v33, %v154_v29  ;;  %vm162_vm0 = vweird.f32 %v401_v33 }
  0xc4   :  { %402 = vrcp.f32 %v155_v34  ;;  %vm163_vm2 = vmor %vm161_vm1, %vm162_vm0  ;;  %v181_v46 = vand.u32 2147483648, %v155_v34  ;;  %v179_v48 = vand.u32 2147483647, %v155_v34  ;;  %vm175_vm5 = vweird.f32 %v155_v34 }
  0xc5   :  { %v158_v36 = vsub.f32 1.0, %v157_v35 }
  0xc6   :  { %v182_v51 = vor.u32 1.1754944e-38, %v181_v46  ;;  %vm180_vm7 = vcmp.eq.f32.partialorder %v179_v48, 8.507059e+37 }
  0xc7   :  { %v159_v37 = vmul.f32 %v401_v33, %v158_v36 }
  0xc9   :  { %v160_v38 = vadd.f32 %v401_v33, %v159_v37 }
  0xca   :  { %v403_v39 = vpop.eup %402 }
  0xcb   :  { %v171_v42 = vmul.f32 %v403_v39, %v155_v34  ;;  %v164_v43 = vsel %vm163_vm2, %v401_v33, %v160_v38  ;;  %vm176_vm4 = vweird.f32 %v403_v39 }
  0xcc   :  { %v169_v49 = vsel %vm166_vm3, %v168_v45, %v164_v43  ;;  %vm177_vm6 = vmor %vm175_vm5, %vm176_vm4 }
  0xcd   :  { %v172_v44 = vsub.f32 1.0, %v171_v42  ;;  %v184_v52 = vmul.f32 %v169_v49, %v152_v28 }
  0xcf   :  { %v173_v47 = vmul.f32 %v403_v39, %v172_v44  ;;  %v186_v56 = vmul.f32 %v184_v52, %v140_v15 }
  0xd1   :  { %v174_v50 = vadd.f32 %v403_v39, %v173_v47 }
  0xd3   :  { %v178_v53 = vsel %vm177_vm6, %v403_v39, %v174_v50 }
  0xd4   :  { %v183_v54 = vsel %vm180_vm7, %v182_v51, %v178_v53 }
  0xd5   :  { %v185_v55 = vmul.f32 %v183_v54, %v153_v32 }
  0xd7   :  { %v187_v57 = vmul.f32 %v185_v55, %v142_v21 }
  0xd9   :  { %v188_v58 = vpack.c.bf16 %v187_v57, %v186_v56 }
  0xdb   :  { %265 = vmatmul.bf16.vlgmr.msra.gmra.mxu1 %v188_v58 }
 0x158   :  { %v266_v60 = vpop.f32.mrf.mxu1 }
 0x159   :  { %v267_v61 = vadd.f32 %v395_v59, %v266_v60 }
 0x15b   :  { %271 = vst [vmem:[%s535_s5] sm:$0xff] %v267_v61  ;;  %273 = vmax.xlane.f32.xlu0 %v267_v61 }
 0x160   :  { %v268_v62 = vpop.f32.mrf.mxu1 }
 0x161   :  { %v269_v63 = vadd.f32 %v395_v59, %v268_v62 }
 0x163   :  { %272 = vst [vmem:[%s535_s5 + $0x8] sm:$0xff] %v269_v63  ;;  %275 = vmax.xlane.f32.xlu0 %v269_v63 }
 0x1ce   :  { %v274_v0 = vpop.xlane.xlu0 %273 }
 0x1cf   :  { %v277_v1 = vsub.f32 %v267_v61, %v274_v0 }
 0x1d1   :  { %v279_v2 = vmul.f32 1.442695, %v277_v1 }
 0x1d3   :  { %404 = vpow2.f32 %v279_v2 }
 0x1d6   :  { %v276_v3 = vpop.xlane.xlu0 %275 }
 0x1d7   :  { %v278_v4 = vsub.f32 %v269_v63, %v276_v3 }
 0x1d9   :  { %v405_v5 = vpop.eup %404  ;;  %v281_v6 = vmul.f32 1.442695, %v278_v4 }
 0x1da   :  { %283 = vadd.xlane.f32.xlu1 %v405_v5 }
 0x1db   :  { %406 = vpow2.f32 %v281_v6 }
 0x1e1   :  { %v407_v7 = vpop.eup %406 }
 0x1e2   :  { %285 = vadd.xlane.f32.xlu1 %v407_v7 }
 0x24d   :  { %v284_v8 = vpop.xlane.xlu1 %283 }
 0x24e   :  { %408 = vlog2.f32 %v284_v8 }
 0x254   :  { %v409_v9 = vpop.eup %408 }
 0x255   :  { %v288_v10 = vmul.f32 0.6931472, %v409_v9  ;;  %v286_v11 = vpop.xlane.xlu1 %285 }
 0x256   :  { %410 = vlog2.f32 %v286_v11 }
 0x257   :  { %v291_v12 = vsub.f32 %v277_v1, %v288_v10 }
 0x259   :  { %293 = vst [vmem:[%s536_s6] sm:$0xff] %v291_v12 }
 0x25c   :  { %v411_v13 = vpop.eup %410 }
 0x25d   :  { %v290_v14 = vmul.f32 0.6931472, %v411_v13 }
 0x25f   :  { %v292_v15 = vsub.f32 %v278_v4, %v290_v14 }
 0x261   :  { %294 = vst [vmem:[%s536_s6 + $0x8] sm:$0xff] %v292_v15 }
 0x262   :  { %303 = vsyncpa [#allocation3], 1 }
 0x263   :  { %304 = vsyncpa [#allocation5], 1 }

</bundles_post_ra>
